<compile_context>
chip_gen: v7x
topology: tpu7x:2x2x1
jax: 0.10.0
libtpu: 0.0.40
codegen_flags: <defaults>
</compile_context>

<pallas_src>
import functools

import jax
import jax.numpy as jnp
from jax.experimental import pallas as pl
from jax.experimental.pallas import tpu as pltpu

N_CLASSES = 10
EMB_DIM = 10
NOISE_DIM = 100
HIDDEN = 128
OUT_FEATURES = 784           # 28 * 28  (true output width; full last dim)
CLS_PADDED = 16              # one-hot width padded for clean sublane tiles
BATCH_ALIGN = 16             # bf16-friendly sublane multiple for batch tiles


def _round_up(x, m):
    return ((x + m - 1) // m) * m


def _cdiv(a, b):
    return -(-a // b)


def _generator_kernel(oh_ref, noise_ref, w1e_ref, w1n_ref, b1_ref,
                      w2_ref, b2_ref, o_ref):
    """One batch tile of the cGAN generator MLP.

    oh_ref    : (TB, 16)   bf16    one-hot(labels), cols 10..15 always zero
    noise_ref : (TB, 100)  float32 latent noise
    w1e_ref   : (16, 128)  bf16    emb_table @ W1[:10]  (rows 10..15 zero)
    w1n_ref   : (100, 128) bf16    W1[10:110]
    b1_ref    : (1, 128)   float32
    w2_ref    : (128, 784) bf16
    b2_ref    : (1, 784)   float32
    o_ref     : (TB, 784)  f32 or bf16
    """
    # Hidden layer: emb-path + noise-path matmuls, f32 accumulation on the MXU.
    h = jnp.dot(oh_ref[...], w1e_ref[...], preferred_element_type=jnp.float32)
    h = h + jnp.dot(noise_ref[...].astype(jnp.bfloat16), w1n_ref[...],
                    preferred_element_type=jnp.float32)
    h = jnp.maximum(h + b1_ref[...], 0.0)                           # ReLU, f32

    # Output layer at true width (784); tanh in the output dtype so bf16
    # outputs use the bf16 EUP path on v6e/v7x (f32 path otherwise).
    y = jnp.dot(h.astype(jnp.bfloat16), w2_ref[...],
                preferred_element_type=jnp.float32)
    z = y + b2_ref[...]
    if o_ref.dtype == jnp.float32:
        o_ref[...] = jnp.tanh(z)
    else:
        o_ref[...] = jnp.tanh(z.astype(o_ref.dtype))


@functools.partial(jax.jit, static_argnames=("block_b", "out_dtype"))
def generator_forward(noise, labels, params, block_b=2048,
                      out_dtype=jnp.bfloat16):
    """noise: (B, 100) f32, labels: (B,) int -> (B, 1, 28, 28) out_dtype."""
    emb_table = params["emb"].astype(jnp.float32)
    w1 = params["w1"].astype(jnp.float32)
    b1 = params["b1"].astype(jnp.float32)
    w2 = params["w2"].astype(jnp.float32)
    b2 = params["b2"].astype(jnp.float32)

    B = noise.shape[0]

    # --- batch tiling: big tiles, but keep >=2 (even) grid steps whenever the
    # batch allows so ("parallel",) can shard across v7x's two TensorCores. ---
    block_b = max(BATCH_ALIGN, _round_up(block_b, BATCH_ALIGN))
    b_min = _round_up(B, BATCH_ALIGN)
    tb = min(block_b, b_min)
    n_steps = _cdiv(b_min, tb)
    if n_steps == 1 and b_min >= 2 * BATCH_ALIGN:
        n_steps = 2
    if n_steps > 1 and n_steps % 2 == 1:
        n_steps += 1
    tb = _round_up(_cdiv(b_min, n_steps), BATCH_ALIGN)
    b_pad = tb * n_steps

    # --- weight preprocessing (tiny, fused by XLA) ---
    # gather(E, l) @ W1[:10]  ==  onehot(l) @ (E @ W1[:10]); pad rows 10..15.
    w1e = jnp.pad(emb_table @ w1[:EMB_DIM],
                  ((0, CLS_PADDED - EMB_DIM), (0, 0))).astype(jnp.bfloat16)
    w1n = w1[EMB_DIM:].astype(jnp.bfloat16)                          # (100, 128)
    w2b = w2.astype(jnp.bfloat16)                                    # (128, 784)
    b1r = b1.reshape(1, HIDDEN)
    b2r = b2.reshape(1, OUT_FEATURES)

    # --- labels -> (B, 16) bf16 one-hot (32 B/row; removes in-kernel iota) ---
    onehot = (labels.astype(jnp.int32)[:, None]
              == jnp.arange(CLS_PADDED, dtype=jnp.int32)[None, :]
              ).astype(jnp.bfloat16)
    noise_f32 = noise.astype(jnp.float32)
    if b_pad != B:
        onehot = jnp.pad(onehot, ((0, b_pad - B), (0, 0)))
        noise_f32 = jnp.pad(noise_f32, ((0, b_pad - B), (0, 0)))

    out_bytes = jnp.dtype(out_dtype).itemsize
    weight_bytes = (2 * (CLS_PADDED * HIDDEN + NOISE_DIM * HIDDEN
                         + HIDDEN * OUT_FEATURES)
                    + 4 * (HIDDEN + OUT_FEATURES))
    cost = pl.CostEstimate(
        flops=2 * b_pad * (CLS_PADDED * HIDDEN + NOISE_DIM * HIDDEN
                           + HIDDEN * OUT_FEATURES),
        transcendentals=b_pad * OUT_FEATURES,
        bytes_accessed=b_pad * (CLS_PADDED * 2 + NOISE_DIM * 4
                                + OUT_FEATURES * out_bytes) + weight_bytes,
    )

    out_padded = pl.pallas_call(
        _generator_kernel,
        out_shape=jax.ShapeDtypeStruct((b_pad, OUT_FEATURES), out_dtype),
        grid=(n_steps,),
        in_specs=[
            pl.BlockSpec((tb, CLS_PADDED), lambda i: (i, 0)),        # one-hot tile
            pl.BlockSpec((tb, NOISE_DIM), lambda i: (i, 0)),         # noise tile
            pl.BlockSpec((CLS_PADDED, HIDDEN), lambda i: (0, 0)),    # w1e (resident)
            pl.BlockSpec((NOISE_DIM, HIDDEN), lambda i: (0, 0)),     # w1n (resident)
            pl.BlockSpec((1, HIDDEN), lambda i: (0, 0)),             # b1  (resident)
            pl.BlockSpec((HIDDEN, OUT_FEATURES), lambda i: (0, 0)),  # w2  (resident)
            pl.BlockSpec((1, OUT_FEATURES), lambda i: (0, 0)),       # b2  (resident)
        ],
        out_specs=pl.BlockSpec((tb, OUT_FEATURES), lambda i: (i, 0)),
        compiler_params=pltpu.CompilerParams(
            dimension_semantics=("parallel",),
            vmem_limit_bytes=48 * 1024 * 1024,
        ),
        cost_estimate=cost,
    )(onehot, noise_f32, w1e, w1n, b1r, w2b, b2r)

    out = out_padded if b_pad == B else out_padded[:B]
    return out.reshape(B, 1, 28, 28)


def init_params(key):
    """Deterministic synthetic parameters matching the PyTorch module shapes."""
    k_emb, k_w1, k_b1, k_w2, k_b2 = jax.random.split(key, 5)
    return {
        "emb": jax.random.normal(k_emb, (10, 10), jnp.float32),
        "w1": jax.random.normal(k_w1, (110, 128), jnp.float32) * 0.05,
        "b1": jax.random.normal(k_b1, (128,), jnp.float32) * 0.05,
        "w2": jax.random.normal(k_w2, (128, 784), jnp.float32) * 0.05,
        "b2": jax.random.normal(k_b2, (784,), jnp.float32) * 0.05,
    }


if __name__ == "__main__":
    key = jax.random.PRNGKey(0)
    k_params, k_noise, k_labels = jax.random.split(key, 3)

    B = 2
    params = init_params(k_params)
    noise = jax.random.normal(k_noise, (B, 100), jnp.float32)
    labels = jax.random.randint(k_labels, (B,), 0, 10, jnp.int32)

    out = generator_forward(noise, labels, params, block_b=256)
    out = jax.block_until_ready(out)

    # Pure-JAX f32 reference check (bf16 matmuls + bf16 output -> loose tol).
    emb = jnp.take(params["emb"], labels, axis=0)
    x = jnp.concatenate([emb, noise], axis=-1)
    h = jnp.maximum(x @ params["w1"] + params["b1"], 0.0)
    ref = jnp.tanh(h @ params["w2"] + params["b2"]).reshape(B, 1, 28, 28)

    assert out.shape == (B, 1, 28, 28), out.shape
    out_f32 = out.astype(jnp.float32)
    max_err = float(jnp.max(jnp.abs(out_f32 - ref)))
    assert jnp.allclose(out_f32, ref, atol=3e-2, rtol=3e-2), f"max_err={max_err}"
    print("KERNEL_OK")
</pallas_src>

<mosaic_0001>
module attributes {stable_mosaic.version = 11 : i64} {
  func.func @_generator_kernel(%arg0: i32, %arg1: memref<16x16xbf16, #tpu.memory_space<vmem>>, %arg2: memref<16x100xf32, #tpu.memory_space<vmem>>, %arg3: memref<16x128xbf16, #tpu.memory_space<vmem>>, %arg4: memref<100x128xbf16, #tpu.memory_space<vmem>>, %arg5: memref<1x128xf32, #tpu.memory_space<vmem>>, %arg6: memref<128x784xbf16, #tpu.memory_space<vmem>>, %arg7: memref<1x784xf32, #tpu.memory_space<vmem>>, %arg8: memref<16x784xbf16, #tpu.memory_space<vmem>>) attributes {dimension_semantics = [#tpu.dimension_semantics<parallel>], iteration_bounds = array<i64: 1>, scalar_prefetch = 0 : i64, scratch_operands = 0 : i64, tpu.core_type = #tpu.core_type<tc>, window_params = [{transform_indices = @transform_0, window_bounds = array<i64: 16, 16>}, {transform_indices = @transform_1, window_bounds = array<i64: 16, 100>}, {pipeline_mode = #tpu.pipeline_mode<synchronous>, transform_indices = @transform_2, window_bounds = array<i64: 16, 128>}, {pipeline_mode = #tpu.pipeline_mode<synchronous>, transform_indices = @transform_3, window_bounds = array<i64: 100, 128>}, {pipeline_mode = #tpu.pipeline_mode<synchronous>, transform_indices = @transform_4, window_bounds = array<i64: 1, 128>}, {pipeline_mode = #tpu.pipeline_mode<synchronous>, transform_indices = @transform_5, window_bounds = array<i64: 128, 784>}, {pipeline_mode = #tpu.pipeline_mode<synchronous>, transform_indices = @transform_6, window_bounds = array<i64: 1, 784>}, {transform_indices = @transform_7, window_bounds = array<i64: 16, 784>}]} {
    %c0 = arith.constant 0 : index
    %c0_0 = arith.constant 0 : index
    %0 = vector.load %arg1[%c0, %c0_0] : memref<16x16xbf16, #tpu.memory_space<vmem>>, vector<16x16xbf16>
    %c0_1 = arith.constant 0 : index
    %c0_2 = arith.constant 0 : index
    %1 = vector.load %arg3[%c0_1, %c0_2] : memref<16x128xbf16, #tpu.memory_space<vmem>>, vector<16x128xbf16>
    %cst = arith.constant dense<0.000000e+00> : vector<16x128xf32>
    %2 = tpu.matmul %0, %1, %cst {dimension_numbers = #tpu.dot_dimension_numbers<[1], [0], [0], [1], [0, 0, 1, 1], [], []>} : vector<16x16xbf16>, vector<16x128xbf16>, vector<16x128xf32> -> vector<16x128xf32>
    %c0_3 = arith.constant 0 : index
    %c0_4 = arith.constant 0 : index
    %3 = vector.load %arg2[%c0_3, %c0_4] : memref<16x100xf32, #tpu.memory_space<vmem>>, vector<16x100xf32>
    %4 = arith.truncf %3 : vector<16x100xf32> to vector<16x100xbf16>
    %c0_5 = arith.constant 0 : index
    %c0_6 = arith.constant 0 : index
    %5 = vector.load %arg4[%c0_5, %c0_6] : memref<100x128xbf16, #tpu.memory_space<vmem>>, vector<100x128xbf16>
    %cst_7 = arith.constant dense<0.000000e+00> : vector<16x128xf32>
    %6 = tpu.matmul %4, %5, %cst_7 {dimension_numbers = #tpu.dot_dimension_numbers<[1], [0], [0], [1], [0, 0, 1, 1], [], []>} : vector<16x100xbf16>, vector<100x128xbf16>, vector<16x128xf32> -> vector<16x128xf32>
    %7 = arith.addf %2, %6 : vector<16x128xf32>
    %c0_8 = arith.constant 0 : index
    %c0_9 = arith.constant 0 : index
    %8 = vector.load %arg5[%c0_8, %c0_9] : memref<1x128xf32, #tpu.memory_space<vmem>>, vector<1x128xf32>
    %9 = vector.broadcast %8 : vector<1x128xf32> to vector<16x128xf32>
    %10 = arith.addf %7, %9 : vector<16x128xf32>
    %cst_10 = arith.constant 0.000000e+00 : f32
    %11 = vector.broadcast %cst_10 : f32 to vector<16x128xf32>
    %12 = arith.maximumf %10, %11 : vector<16x128xf32>
    %13 = arith.truncf %12 : vector<16x128xf32> to vector<16x128xbf16>
    %c0_11 = arith.constant 0 : index
    %c0_12 = arith.constant 0 : index
    %14 = vector.load %arg6[%c0_11, %c0_12] : memref<128x784xbf16, #tpu.memory_space<vmem>>, vector<128x784xbf16>
    %cst_13 = arith.constant dense<0.000000e+00> : vector<16x784xf32>
    %15 = tpu.matmul %13, %14, %cst_13 {dimension_numbers = #tpu.dot_dimension_numbers<[1], [0], [0], [1], [0, 0, 1, 1], [], []>} : vector<16x128xbf16>, vector<128x784xbf16>, vector<16x784xf32> -> vector<16x784xf32>
    %c0_14 = arith.constant 0 : index
    %c0_15 = arith.constant 0 : index
    %16 = vector.load %arg7[%c0_14, %c0_15] : memref<1x784xf32, #tpu.memory_space<vmem>>, vector<1x784xf32>
    %17 = vector.broadcast %16 : vector<1x784xf32> to vector<16x784xf32>
    %18 = arith.addf %15, %17 : vector<16x784xf32>
    %19 = arith.truncf %18 : vector<16x784xf32> to vector<16x784xbf16>
    %20 = math.tanh %19 : vector<16x784xbf16>
    %c0_16 = arith.constant 0 : index
    %c0_17 = arith.constant 0 : index
    %21 = vector.load %arg8[%c0_16, %c0_17] : memref<16x784xbf16, #tpu.memory_space<vmem>>, vector<16x784xbf16>
    tpu.vector_store %arg8[%c0_16, %c0_17], %20 {strides = array<i32>} : memref<16x784xbf16, #tpu.memory_space<vmem>>, vector<16x784xbf16>,
    return
  }
  func.func @transform_0(%arg0: i32) -> (i32, i32) {
    %c0_i32 = arith.constant 0 : i32
    %c0_i32_0 = arith.constant 0 : i32
    return %arg0, %c0_i32 : i32, i32
  }
  func.func @transform_1(%arg0: i32) -> (i32, i32) {
    %c0_i32 = arith.constant 0 : i32
    %c0_i32_0 = arith.constant 0 : i32
    return %arg0, %c0_i32 : i32, i32
  }
  func.func @transform_2(%arg0: i32) -> (i32, i32) {
    %c0_i32 = arith.constant 0 : i32
    %c0_i32_0 = arith.constant 0 : i32
    %c0_i32_1 = arith.constant 0 : i32
    return %c0_i32, %c0_i32_0 : i32, i32
  }
  func.func @transform_3(%arg0: i32) -> (i32, i32) {
    %c0_i32 = arith.constant 0 : i32
    %c0_i32_0 = arith.constant 0 : i32
    %c0_i32_1 = arith.constant 0 : i32
    return %c0_i32, %c0_i32_0 : i32, i32
  }
  func.func @transform_4(%arg0: i32) -> (i32, i32) {
    %c0_i32 = arith.constant 0 : i32
    %c0_i32_0 = arith.constant 0 : i32
    %c0_i32_1 = arith.constant 0 : i32
    return %c0_i32, %c0_i32_0 : i32, i32
  }
  func.func @transform_5(%arg0: i32) -> (i32, i32) {
    %c0_i32 = arith.constant 0 : i32
    %c0_i32_0 = arith.constant 0 : i32
    %c0_i32_1 = arith.constant 0 : i32
    return %c0_i32, %c0_i32_0 : i32, i32
  }
  func.func @transform_6(%arg0: i32) -> (i32, i32) {
    %c0_i32 = arith.constant 0 : i32
    %c0_i32_0 = arith.constant 0 : i32
    %c0_i32_1 = arith.constant 0 : i32
    return %c0_i32, %c0_i32_0 : i32, i32
  }
  func.func @transform_7(%arg0: i32) -> (i32, i32) {
    %c0_i32 = arith.constant 0 : i32
    %c0_i32_0 = arith.constant 0 : i32
    return %arg0, %c0_i32 : i32, i32
  }
}

</mosaic_0001>

<bundles_post_ra>
// kernel: generator_forward.1
= control target key start
LH: loop header
LB: loop body
LE: loop exit
PB: predicated region body
PF: predicated region fallthrough
CT: control target
= control target key end

     0   :  { %v1071_v0 = vmov 0.0   ;;  %vm1072_vm0 = vmmov 0   ;;  %vm146_vm1 = vcmask 130048   ;;  %vm90_vm2 = vcmask 1041408   ;;  %s1367_s3 = inlined_call_operand.vmem [shape: bf16[100,128], index: 3, kind: input, shape index: {}]   ;;  %s1368_s2 = inlined_call_operand.vmem [shape: bf16[16,128], index: 2, kind: input, shape index: {}]   ;;  %s1369_s0 = inlined_call_operand.vmem [shape: bf16[16,16], index: 0, kind: input, shape index: {}]   ;;  %s1370_s5 = inlined_call_operand.vmem [shape: bf16[128,784], index: 5, kind: input, shape index: {}]   ;;  %s1371_s1 = inlined_call_operand.vmem [shape: f32[16,100], index: 1, kind: input, shape index: {}]   ;;  %s1372_s4 = inlined_call_operand.vmem [shape: f32[1,128], index: 4, kind: input, shape index: {}]   ;;  %s1373_s6 = inlined_call_operand.vmem [shape: f32[1,784], index: 6, kind: input, shape index: {}]   ;;  %s1374_s7 = inlined_call_operand.vmem [shape: bf16[16,784], index: 7, kind: output, shape index: {}]  }
   0x1   :  { %921 = vmatprep.subr.bf16.mxu0 %v1071_v0  ;;  %v968_v1 = vld [vmem:[%s1367_s3] sm:$0xff]   ;;  %939 = vmatprep.subr.bf16.mxu1 %v1071_v0  ;;  %v969_v2 = vld [vmem:[%s1367_s3 + $0x8] sm:$0xff]   ;;  %v970_v3 = vld [vmem:[%s1367_s3 + $0x10] sm:$0xff]   ;;  %vm86_vm3 = vcmask 818176   ;;  %v1073_v47 = vmov 0   ;;  %vm816_vm4 = vcmask 125952  }
   0x2   :  { %941 = vmatprep.mubr.msk.bf16.mxu1 %vm1072_vm0, %v1071_v0  ;;  %935 = vmatprep.mubr.msk.bf16.mxu0 %vm1072_vm0, %v1071_v0  ;;  %v974_v4 = vld [vmem:[%s1368_s2] sm:$0xff]   ;;  %v971_v6 = vld [vmem:[%s1367_s3 + $0x18] sm:$0xff]   ;;  %v991_v12 = vld [vmem:[%s1370_s5 + $0x74] ss:$28 sps:$4 sm:$0xff]  }
   0x3   :  { %922 = vmatpush3.bf16.msra.mxu0 %v968_v1  ;;  %v976_v5 = vld [vmem:[%s1369_s0] sm:$0xff]   ;;  %940 = vmatpush3.bf16.msra.mxu1 %v974_v4  ;;  %v983_v9 = vld [vmem:[%s1370_s5 + $0x38] ss:$28 sps:$4 sm:$0xff]   ;;  %v989_v13 = vld [vmem:[%s1370_s5 + $0x70] ss:$28 sps:$4 sm:$0xff]  }
   0x4   :  { %923 = vmatprep.subr.bf16.mxu0 %v1071_v0  ;;  %v977_v7 = vld [vmem:[%s1370_s5] ss:$28 sps:$4 sm:$0xff]   ;;  %v973_v14 = vld [vmem:[%s1367_s3 + $0x28] sm:$0xff]   ;;  %v975_v16 = vld [vmem:[%s1367_s3 + $0x30] ss:$0 sps:$4 sm:$0x33]  }
   0x5   :  { %v979_v8 = vld [vmem:[%s1370_s5 + $0x4] ss:$28 sps:$4 sm:$0xff]   ;;  %v985_v10 = vld [vmem:[%s1370_s5 + $0x3c] ss:$28 sps:$4 sm:$0xff]   ;;  %v997_v15 = vld [vmem:[%s1370_s5 + $0xac] ss:$28 sps:$4 sm:$0xff]  }
   0x6   :  { %942 = vmatmul.mubr.msk.bf16.vlgmr.msra.gmra.mrb[0].mxu1 %vm146_vm1, %v976_v5  ;;  %592 = vmatprep.subr.bf16.mxu1 %v979_v8  ;;  %v972_v11 = vld [vmem:[%s1367_s3 + $0x20] sm:$0xff]   ;;  %v32_v18 = vld [vmem:[%s1371_s1 + $0x8] sm:$0xff]  ;;  %v92_v22 = vsel %vm90_vm2, %v975_v16, 0  ;;  %v994_v28 = vld [vmem:[%s1370_s5 + $0x7c] ss:$28 sps:$4 sm:$0xff]  }
   0x7   :  { %924 = vmatpush3.bf16.msra.mxu0 %v969_v2  ;;  %593 = vmatpush1.bf16.msra.mxu1 %v977_v7  ;;  %v31_v17 = vld [vmem:[%s1371_s1] sm:$0xff]  ;;  %v982_v20 = vld [vmem:[%s1370_s5 + $0xc] ss:$28 sps:$4 sm:$0xff]   ;;  %v992_v29 = vld [vmem:[%s1370_s5 + $0x78] ss:$28 sps:$4 sm:$0xff]  }
   0x8   :  { %925 = vmatprep.subr.bf16.mxu0 %v1071_v0  ;;  %594 = vmatprep.subr.bf16.mxu1 %v985_v10  ;;  %v995_v19 = vld [vmem:[%s1370_s5 + $0xa8] ss:$28 sps:$4 sm:$0xff]   ;;  %v1001_v23 = vld [vmem:[%s1370_s5 + $0xe0] ss:$28 sps:$4 sm:$0xff]   ;;  %v33_v25 = vpack.c.bf16 %v32_v18, %v31_v17  ;;  %v1000_v30 = vld [vmem:[%s1370_s5 + $0xb4] ss:$28 sps:$4 sm:$0xff]  }
   0x9   :  { %v1003_v21 = vld [vmem:[%s1370_s5 + $0xe4] ss:$28 sps:$4 sm:$0xff]   ;;  %v998_v31 = vld [vmem:[%s1370_s5 + $0xb0] ss:$28 sps:$4 sm:$0xff]   ;;  %v1007_v34 = vld [vmem:[%s1370_s5 + $0x118] ss:$28 sps:$4 sm:$0xff]   ;;  %624 = vmatprep.mubr.bf16.mxu1 %v1073_v47 }
   0xa   :  { %v980_v24 = vld [vmem:[%s1370_s5 + $0x8] ss:$28 sps:$4 sm:$0xff]   ;;  %v986_v27 = vld [vmem:[%s1370_s5 + $0x40] ss:$28 sps:$4 sm:$0xff]   ;;  %v1015_v38 = vld [vmem:[%s1370_s5 + $0x154] ss:$28 sps:$4 sm:$0xff]  }
   0xb   :  { %926 = vmatpush3.bf16.msra.mxu0 %v970_v3  ;;  %595 = vmatpush1.bf16.msra.mxu1 %v983_v9  ;;  %v988_v26 = vld [vmem:[%s1370_s5 + $0x44] ss:$28 sps:$4 sm:$0xff]   ;;  %v1006_v32 = vld [vmem:[%s1370_s5 + $0xec] ss:$28 sps:$4 sm:$0xff]   ;;  %v1009_v35 = vld [vmem:[%s1370_s5 + $0x11c] ss:$28 sps:$4 sm:$0xff]  }
   0xc   :  { %927 = vmatprep.subr.bf16.mxu0 %v1071_v0  ;;  %596 = vmatprep.subr.bf16.mxu1 %v991_v12  ;;  %v1004_v33 = vld [vmem:[%s1370_s5 + $0xe8] ss:$28 sps:$4 sm:$0xff]   ;;  %v1010_v36 = vld [vmem:[%s1370_s5 + $0x120] ss:$28 sps:$4 sm:$0xff]   ;;  %v1013_v40 = vld [vmem:[%s1370_s5 + $0x150] ss:$28 sps:$4 sm:$0xff]  }
   0xd   :  { %v1012_v37 = vld [vmem:[%s1370_s5 + $0x124] ss:$28 sps:$4 sm:$0xff]   ;;  %v1018_v39 = vld [vmem:[%s1370_s5 + $0x15c] ss:$28 sps:$4 sm:$0xff]   ;;  %v1021_v42 = vld [vmem:[%s1370_s5 + $0x18c] ss:$28 sps:$4 sm:$0xff]  }
   0xe   :  { %v1016_v41 = vld [vmem:[%s1370_s5 + $0x158] ss:$28 sps:$4 sm:$0xff]   ;;  %v1019_v44 = vld [vmem:[%s1370_s5 + $0x188] ss:$28 sps:$4 sm:$0xff]   ;;  %v1022_v45 = vld [vmem:[%s1370_s5 + $0x190] ss:$28 sps:$4 sm:$0xff]  }
   0xf   :  { %928 = vmatpush3.bf16.msra.mxu0 %v971_v6  ;;  %597 = vmatpush1.bf16.msra.mxu1 %v989_v13  ;;  %v1024_v43 = vld [vmem:[%s1370_s5 + $0x194] ss:$28 sps:$4 sm:$0xff]   ;;  %v837_v53 = vld [vmem:[%s1372_s4] ss:$0 sm:$0xff]  ;;  %v1031_v3 = vld [vmem:[%s1370_s5 + $0x4c] ss:$28 sps:$4 sm:$0xff]  }
  0x10   :  { %929 = vmatprep.subr.bf16.mxu0 %v1071_v0  ;;  %598 = vmatprep.subr.bf16.mxu1 %v997_v15  ;;  %v1027_v46 = vld [vmem:[%s1370_s5 + $0x14] ss:$28 sps:$4 sm:$0xff]   ;;  %v1029_v4 = vld [vmem:[%s1370_s5 + $0x48] ss:$28 sps:$4 sm:$0xff]   ;;  %v1033_v7 = vld [vmem:[%s1370_s5 + $0x80] ss:$28 sps:$4 sm:$0xff]  }
  0x11   :  { %v1025_v63 = vld [vmem:[%s1370_s5 + $0x10] ss:$28 sps:$4 sm:$0xff]   ;;  %v1028_v1 = vld [vmem:[%s1370_s5 + $0x18] ss:$28 sps:$4 sm:$0xff]   ;;  %v1035_v6 = vld [vmem:[%s1370_s5 + $0x84] ss:$28 sps:$4 sm:$0xff]  }
  0x12   :  { %v1032_v5 = vld [vmem:[%s1370_s5 + $0x50] ss:$28 sps:$4 sm:$0xff]   ;;  %v1036_v8 = vld [vmem:[%s1370_s5 + $0x88] ss:$28 sps:$4 sm:$0xff]   ;;  %v1039_v9 = vld [vmem:[%s1370_s5 + $0xbc] ss:$28 sps:$4 sm:$0xff]  }
  0x13   :  { %930 = vmatpush3.bf16.msra.mxu0 %v972_v11  ;;  %599 = vmatpush1.bf16.msra.mxu1 %v995_v19  ;;  %v1037_v10 = vld [vmem:[%s1370_s5 + $0xb8] ss:$28 sps:$4 sm:$0xff]   ;;  %v1040_v11 = vld [vmem:[%s1370_s5 + $0xc0] ss:$28 sps:$4 sm:$0xff]   ;;  %v1041_v13 = vld [vmem:[%s1370_s5 + $0xf0] ss:$28 sps:$4 sm:$0xff]  }
  0x14   :  { %931 = vmatprep.subr.bf16.mxu0 %v1071_v0  ;;  %600 = vmatprep.subr.bf16.mxu1 %v1003_v21  ;;  %v1043_v12 = vld [vmem:[%s1370_s5 + $0xf4] ss:$28 sps:$4 sm:$0xff]   ;;  %v1047_v15 = vld [vmem:[%s1370_s5 + $0x12c] ss:$28 sps:$4 sm:$0xff]   ;;  %v1051_v18 = vld [vmem:[%s1370_s5 + $0x164] ss:$28 sps:$4 sm:$0xff]  }
  0x15   :  { %v1045_v16 = vld [vmem:[%s1370_s5 + $0x128] ss:$28 sps:$4 sm:$0xff]   ;;  %v1048_v17 = vld [vmem:[%s1370_s5 + $0x130] ss:$28 sps:$4 sm:$0xff]   ;;  %v1049_v19 = vld [vmem:[%s1370_s5 + $0x160] ss:$28 sps:$4 sm:$0xff]  }
  0x16   :  { %v1055_v21 = vld [vmem:[%s1370_s5 + $0x19c] ss:$28 sps:$4 sm:$0xff]  }
  0x17   :  { %932 = vmatpush3.bf16.msra.mxu0 %v973_v14  ;;  %601 = vmatpush1.bf16.msra.mxu1 %v1001_v23  ;;  %v1044_v14 = vld [vmem:[%s1370_s5 + $0xf8] ss:$28 sps:$4 sm:$0xff]   ;;  %v1056_v23 = vld [vmem:[%s1370_s5 + $0x1a0] ss:$28 sps:$4 sm:$0xff]  }
  0x18   :  { %933 = vmatprep.subr.bf16.mxu0 %v1071_v0  ;;  %602 = vmatprep.subr.bf16.mxu1 %v1009_v35 }
  0x1b   :  { %934 = vmatpush3.bf16.msra.mxu0 %v92_v22  ;;  %603 = vmatpush1.bf16.msra.mxu1 %v1007_v34  ;;  %v1053_v22 = vld [vmem:[%s1370_s5 + $0x198] ss:$28 sps:$4 sm:$0xff]  }
  0x1c   :  { %635 = vmatprep.subr.bf16.mxu0 %v982_v20  ;;  %604 = vmatprep.subr.bf16.mxu1 %v1015_v38  ;;  %v1052_v20 = vld [vmem:[%s1370_s5 + $0x168] ss:$28 sps:$4 sm:$0xff]  }
  0x1e   :  { %936 = vmatmul.mubr.msk.bf16.vlgmr.msra.gmra.mrb[0].mxu0 %vm86_vm3, %v33_v25 }
  0x1f   :  { %636 = vmatpush1.bf16.msra.mxu0 %v980_v24  ;;  %605 = vmatpush1.bf16.msra.mxu1 %v1013_v40  ;;  %v269_v24 = vlaneseq }
  0x20   :  { %637 = vmatprep.subr.bf16.mxu0 %v988_v26  ;;  %606 = vmatprep.subr.bf16.mxu1 %v1021_v42 }
  0x21   :  { %667 = vmatprep.mubr.bf16.mxu0 %v1073_v47  ;;  %v270_v25 = vshrl.u32 %v269_v24, 7 }
  0x23   :  { %638 = vmatpush1.bf16.msra.mxu0 %v986_v27  ;;  %607 = vmatpush1.bf16.msra.mxu1 %v1019_v44  ;;  %v271_v26 = vsub.s32 0, %v270_v25  ;;  %v279_v27 = vsub.s32 2, %v270_v25 }
  0x24   :  { %639 = vmatprep.subr.bf16.mxu0 %v994_v28  ;;  %678 = vmatprep.subr.bf16.mxu1 %v1027_v46  ;;  %v267_v28 = vld [vmem:[%s1373_s6] sm:$0x7f] }
  0x27   :  { %640 = vmatpush1.bf16.msra.mxu0 %v992_v29  ;;  %v275_v29 = vsub.s32 1, %v270_v25 }
  0x28   :  { %641 = vmatprep.subr.bf16.mxu0 %v1000_v30  ;;  %v283_v30 = vsub.s32 3, %v270_v25 }
  0x29   :  { %v276_v35 = vrot.slane %v267_v28, %v275_v29 }
  0x2b   :  { %642 = vmatpush1.bf16.msra.mxu0 %v998_v31  ;;  %v272_v31 = vrot.slane %v267_v28, %v271_v26 }
  0x2c   :  { %643 = vmatprep.subr.bf16.mxu0 %v1006_v32  ;;  %v280_v32 = vrot.slane %v267_v28, %v279_v27 }
  0x2f   :  { %644 = vmatpush1.bf16.msra.mxu0 %v1004_v33 }
  0x30   :  { %645 = vmatprep.subr.bf16.mxu0 %v1012_v37 }
  0x33   :  { %646 = vmatpush1.bf16.msra.mxu0 %v1010_v36 }
  0x34   :  { %647 = vmatprep.subr.bf16.mxu0 %v1018_v39 }
  0x37   :  { %648 = vmatpush1.bf16.msra.mxu0 %v1016_v41 }
  0x38   :  { %649 = vmatprep.subr.bf16.mxu0 %v1024_v43 }
  0x3b   :  { %650 = vmatpush1.bf16.msra.mxu0 %v1022_v45 }
  0x3c   :  { %945 = vmatprep.subr.bf16.mxu0 %v1071_v0 }
  0xd9   :  { %v184_v48 = vpop.f32.mrb[0].mxu1 }
  0xda   :  { %v943_v49 = vpop.f32.mrb[1].mxu1 }
  0xdb   :  { %v187_v50 = vpop.f32.mrb[2].mxu1 }
  0xdc   :  { %v944_v51 = vpop.f32.mrb[3].mxu1 }
  0xf1   :  { %v128_v52 = vpop.f32.mrb[0].mxu0 }
  0xf2   :  { %v185_v54 = vadd.f32 %v184_v48, %v128_v52  ;;  %v937_v55 = vpop.f32.mrb[1].mxu0 }
  0xf3   :  { %v131_v56 = vpop.f32.mrb[2].mxu0 }
  0xf4   :  { %v198_v57 = vadd.f32 %v837_v53, %v185_v54  ;;  %v188_v58 = vadd.f32 %v187_v50, %v131_v56  ;;  %v938_v59 = vpop.f32.mrb[3].mxu0 }
  0xf6   :  { %v199_v60 = vadd.f32 %v837_v53, %v188_v58  ;;  %v200_v61 = vmax.f32 %v198_v57, 0.0 }
  0xf8   :  { %v201_v62 = vmax.f32 %v199_v60, 0.0 }
  0xfa   :  { %v202_v2 = vpack.c.bf16 %v201_v62, %v200_v61  ;;  %v287_v62 = vsub.s32 4, %v270_v25 }
  0xfc   :  { %625 = vmatmul.mubr.bf16.vlgmr.msra.gmra.mrb[4].mxu1 %v202_v2  ;;  %668 = vmatmul.mubr.bf16.vlgmr.msra.gmra.mrb[4].mxu0 %v202_v2 }
  0xfd   :  { %679 = vmatpush1.bf16.msra.mxu1 %v1025_v63  ;;  %946 = vmatpush3.bf16.msra.mxu0 %v1028_v1  ;;  %v295_v63 = vsub.s32 6, %v270_v25  ;;  %v291_v1 = vsub.s32 5, %v270_v25 }
  0xfe   :  { %680 = vmatprep.subr.bf16.mxu1 %v1031_v3  ;;  %947 = vmatprep.subr.bf16.mxu0 %v1071_v0 }
  0xff   :  { %710 = vmatprep.mubr.bf16.mxu1 %v1073_v47  ;;  %961 = vmatprep.mubr.msk.bf16.mxu0 %vm1072_vm0, %v1071_v0  ;;  %v296_v3 = vrot.slane %v267_v28, %v295_v63 }
 0x101   :  { %681 = vmatpush1.bf16.msra.mxu1 %v1029_v4  ;;  %948 = vmatpush3.bf16.msra.mxu0 %v1032_v5 }
 0x102   :  { %682 = vmatprep.subr.bf16.mxu1 %v1035_v6  ;;  %949 = vmatprep.subr.bf16.mxu0 %v1071_v0  ;;  %v292_v6 = vrot.slane %v267_v28, %v291_v1 }
 0x105   :  { %683 = vmatpush1.bf16.msra.mxu1 %v1033_v7  ;;  %950 = vmatpush3.bf16.msra.mxu0 %v1036_v8 }
 0x106   :  { %684 = vmatprep.subr.bf16.mxu1 %v1039_v9  ;;  %951 = vmatprep.subr.bf16.mxu0 %v1071_v0 }
 0x109   :  { %685 = vmatpush1.bf16.msra.mxu1 %v1037_v10  ;;  %952 = vmatpush3.bf16.msra.mxu0 %v1040_v11 }
 0x10a   :  { %686 = vmatprep.subr.bf16.mxu1 %v1043_v12  ;;  %953 = vmatprep.subr.bf16.mxu0 %v1071_v0 }
 0x10d   :  { %687 = vmatpush1.bf16.msra.mxu1 %v1041_v13  ;;  %954 = vmatpush3.bf16.msra.mxu0 %v1044_v14 }
 0x10e   :  { %688 = vmatprep.subr.bf16.mxu1 %v1047_v15  ;;  %955 = vmatprep.subr.bf16.mxu0 %v1071_v0 }
 0x111   :  { %689 = vmatpush1.bf16.msra.mxu1 %v1045_v16  ;;  %956 = vmatpush3.bf16.msra.mxu0 %v1048_v17 }
 0x112   :  { %690 = vmatprep.subr.bf16.mxu1 %v1051_v18  ;;  %957 = vmatprep.subr.bf16.mxu0 %v1071_v0 }
 0x115   :  { %691 = vmatpush1.bf16.msra.mxu1 %v1049_v19  ;;  %958 = vmatpush3.bf16.msra.mxu0 %v1052_v20 }
 0x116   :  { %692 = vmatprep.subr.bf16.mxu1 %v1055_v21  ;;  %959 = vmatprep.subr.bf16.mxu0 %v1071_v0  ;;  %v284_v0 = vrot.slane %v267_v28, %v283_v30 }
 0x119   :  { %693 = vmatpush1.bf16.msra.mxu1 %v1053_v22  ;;  %960 = vmatpush3.bf16.msra.mxu0 %v1056_v23 }
 0x11c   :  { %711 = vmatmul.mubr.bf16.vlgmr.msra.gmra.mrb[8].mxu1 %v202_v2  ;;  %962 = vmatmul.mubr.bf16.vlgmr.msra.gmra.mrb[8].mxu0 %v202_v2  ;;  %v288_v2 = vrot.slane %v267_v28, %v287_v62 }
 0x1cf   :  { %v626_v33 = vpop.f32.mrb[4].mxu1  ;;  %v669_v34 = vpop.f32.mrb[4].mxu0 }
 0x1d0   :  { %v628_v36 = vpop.f32.mrb[5].mxu1  ;;  %v671_v37 = vpop.f32.mrb[5].mxu0  ;;  %v627_v40 = vadd.f32 %v626_v33, %v272_v31  ;;  %v670_v41 = vadd.f32 %v669_v34, %v280_v32 }
 0x1d1   :  { %v630_v38 = vpop.f32.mrb[6].mxu1  ;;  %v673_v39 = vpop.f32.mrb[6].mxu0  ;;  %v629_v46 = vadd.f32 %v628_v36, %v276_v35  ;;  %v672_v47 = vadd.f32 %v671_v37, %v284_v0 }
 0x1d2   :  { %v631_v42 = vadd.f32 %v630_v38, %v272_v31  ;;  %v674_v43 = vadd.f32 %v673_v39, %v280_v32  ;;  %v632_v44 = vpop.f32.mrb[7].mxu1  ;;  %v675_v45 = vpop.f32.mrb[7].mxu0 }
 0x1d3   :  { %v633_v48 = vadd.f32 %v632_v44, %v276_v35  ;;  %v676_v49 = vadd.f32 %v675_v45, %v284_v0 }
 0x1d4   :  { %v762_v50 = vpack.c.bf16 %v631_v42, %v627_v40  ;;  %v764_v51 = vpack.c.bf16 %v674_v43, %v670_v41 }
 0x1d5   :  { %v763_v52 = vpack.c.bf16 %v633_v48, %v629_v46  ;;  %v765_v53 = vpack.c.bf16 %v676_v49, %v672_v47 }
 0x1d6   :  { %1057 = vtanh.bf16 %v762_v50 }
 0x1d7   :  { %1059 = vtanh.bf16 %v764_v51 }
 0x1d8   :  { %1061 = vtanh.bf16 %v763_v52 }
 0x1d9   :  { %1063 = vtanh.bf16 %v765_v53 }
 0x1e1   :  { %v1058_v54 = vpop.eup %1057 }
 0x1e2   :  { %v1060_v55 = vpop.eup %1059 }
 0x1e3   :  { %v1062_v56 = vpop.eup %1061 }
 0x1e4   :  { %v1064_v57 = vpop.eup %1063  ;;  %v894_v58 = vcombine.low %v1058_v54, %v1062_v56  ;;  %v898_v59 = vcombine.high %v1058_v54, %v1062_v56 }
 0x1e5   :  { %v895_v60 = vcombine.low %v1060_v55, %v1064_v57  ;;  %v899_v61 = vcombine.high %v1060_v55, %v1064_v57 }
 0x1e6   :  { %813 = vst [vmem:[%s1374_s7] sm:$0xff] %v894_v58  ;;  %818 = vst [vmem:[%s1374_s7 + $0x1c] sm:$0xff] %v898_v59 }
 0x1e7   :  { %814 = vst [vmem:[%s1374_s7 + $0x8] sm:$0xff] %v895_v60  ;;  %819 = vst [vmem:[%s1374_s7 + $0x24] sm:$0xff] %v899_v61 }
 0x1ef   :  { %v712_v4 = vpop.f32.mrb[8].mxu1  ;;  %v755_v5 = vpop.f32.mrb[8].mxu0 }
 0x1f0   :  { %v714_v7 = vpop.f32.mrb[9].mxu1  ;;  %v963_v8 = vpop.f32.mrb[9].mxu0  ;;  %v713_v11 = vadd.f32 %v712_v4, %v288_v2  ;;  %v756_v12 = vadd.f32 %v755_v5, %v296_v3 }
 0x1f1   :  { %v716_v9 = vpop.f32.mrb[10].mxu1  ;;  %v758_v10 = vpop.f32.mrb[10].mxu0  ;;  %v715_v17 = vadd.f32 %v714_v7, %v292_v6 }
 0x1f2   :  { %v717_v13 = vadd.f32 %v716_v9, %v288_v2  ;;  %v759_v14 = vadd.f32 %v758_v10, %v296_v3  ;;  %v718_v15 = vpop.f32.mrb[11].mxu1  ;;  %v964_v16 = vpop.f32.mrb[11].mxu0 }
 0x1f3   :  { %v719_v18 = vadd.f32 %v718_v15, %v292_v6 }
 0x1f4   :  { %v766_v19 = vpack.c.bf16 %v717_v13, %v713_v11  ;;  %v768_v20 = vpack.c.bf16 %v759_v14, %v756_v12 }
 0x1f5   :  { %v767_v21 = vpack.c.bf16 %v719_v18, %v715_v17 }
 0x1f6   :  { %1065 = vtanh.bf16 %v766_v19 }
 0x1f7   :  { %1067 = vtanh.bf16 %v768_v20 }
 0x1f8   :  { %1069 = vtanh.bf16 %v767_v21 }
 0x201   :  { %v1066_v22 = vpop.eup %1065 }
 0x202   :  { %v1068_v23 = vpop.eup %1067 }
 0x203   :  { %v1070_v24 = vpop.eup %1069  ;;  %v897_v25 = vcombine.low %v1068_v23, %v1068_v23  ;;  %v901_v26 = vcombine.high %v1068_v23, %v1068_v23 }
 0x204   :  { %v896_v27 = vcombine.low %v1066_v22, %v1070_v24  ;;  %v900_v28 = vcombine.high %v1066_v22, %v1070_v24 }
 0x205   :  { %817 = vst.msk [vmem:[%s1374_s7 + $0x18] sm:$0xf] %vm816_vm4, %v897_v25  ;;  %821 = vst.msk [vmem:[%s1374_s7 + $0x34] sm:$0xf] %vm816_vm4, %v901_v26 }
 0x206   :  { %815 = vst [vmem:[%s1374_s7 + $0x10] sm:$0xff] %v896_v27  ;;  %820 = vst [vmem:[%s1374_s7 + $0x2c] sm:$0xff] %v900_v28 }

</bundles_post_ra>
